<compile_context>
chip_gen: v6e
topology: v6e:2x2x1
jax: 0.10.0
libtpu: 0.0.40
codegen_flags: <defaults>
</compile_context>

<pallas_src>
import functools

import jax
import jax.numpy as jnp
from jax.experimental import pallas as pl
from jax.experimental.pallas import tpu as pltpu

_MIB = 1024 * 1024
_GEN_TILE = {"v7": 8192, "v6": 4096, "v5": 2048}
_GEN_VMEM_LIMIT = {"v7": 48 * _MIB, "v6": 64 * _MIB, "v5": 32 * _MIB}


def _round_up(x: int, m: int) -> int:
    return ((x + m - 1) // m) * m


def _sublane_multiple(dtype) -> int:
    return {4: 8, 2: 16, 1: 32}.get(jnp.dtype(dtype).itemsize, 8)


def _tpu_generation() -> str:
    try:
        kind = jax.devices()[0].device_kind.lower()
    except Exception:
        return "unknown"
    for gen in ("v7", "v6", "v5"):
        if gen in kind:
            return gen
    return "unknown"


def _vmem_capacity_bytes() -> int:
    try:
        return int(pltpu.get_tpu_info().vmem_capacity_bytes)
    except Exception:
        return 64 * _MIB  # conservative (v7x-sized) default


def _fused_gather_kernel(src_ref, dst_ref, zsT_ref, zT_ref, out_ref, *, sigmoid):
    """In-kernel gather via one-hot MXU matmul against VMEM-resident node tables.

    src_ref/dst_ref: (1, TE) int32 edge endpoints for this tile
    zsT_ref:         (D, N)  weight-scaled node table, feature-major, resident
    zT_ref:          (D, N)  raw node table, feature-major, resident
    out_ref:         (1, TE) per-edge score (lane-dense)
    """
    n = zT_ref.shape[1]
    te = src_ref.shape[1]
    mm_dtype = zT_ref.dtype  # bf16 stays bf16 on the MXU (f32 accumulate below)

    node_ids = jax.lax.broadcasted_iota(jnp.int32, (n, te), 0)
    onehot_src = (node_ids == src_ref[...]).astype(mm_dtype)   # (N, TE)
    onehot_dst = (node_ids == dst_ref[...]).astype(mm_dtype)   # (N, TE)

    # (D, N) @ (N, TE) -> (D, TE); exact row gather (one nonzero per column),
    # f32 accumulation.
    g_src = jnp.dot(zsT_ref[...], onehot_src, preferred_element_type=jnp.float32)
    g_dst = jnp.dot(zT_ref[...], onehot_dst, preferred_element_type=jnp.float32)

    val = jnp.sum(g_src * g_dst, axis=0, keepdims=True)        # (1, TE)
    if sigmoid:
        val = jax.nn.sigmoid(val)
    out_ref[...] = val.astype(out_ref.dtype)


def _streaming_kernel(zsrc_ref, zdst_ref, out_ref, *, sigmoid):
    """Fallback: pre-gathered feature-major (D, TE) streams; sublane reduce.

    f32 product kept for accuracy on all generations (kernel is HBM-bound, so
    the extra VPU cost is hidden; v5e has no bf16 VALU anyway).
    """
    prod = zsrc_ref[...].astype(jnp.float32) * zdst_ref[...].astype(jnp.float32)
    val = jnp.sum(prod, axis=0, keepdims=True)                  # (1, TE)
    if sigmoid:
        val = jax.nn.sigmoid(val)
    out_ref[...] = val.astype(out_ref.dtype)


def tf_decoder_forward(z, weight, edge_index, sigmoid=True, tile_e=None,
                       force_path=None):
    """Pallas implementation of TFDecoder.forward.

    z:          [num_nodes, D] float
    weight:     [num_nodes]    float
    edge_index: [2, E]         int
    returns:    [E]            z.dtype
    """
    num_nodes, dim = z.shape
    E = edge_index.shape[1]
    itemsize = jnp.dtype(z.dtype).itemsize

    gen = _tpu_generation()
    vmem_limit = min(_GEN_VMEM_LIMIT.get(gen, 32 * _MIB),
                     max(32 * _MIB, _vmem_capacity_bytes() - 16 * _MIB))
    vmem_budget = vmem_limit - 8 * _MIB

    # --- edge-tile selection (lane-dense: tile is a multiple of 128) --------
    tile = tile_e if tile_e is not None else _GEN_TILE.get(gen, 2048)
    tile = max(128, _round_up(int(tile), 128))
    tile = min(tile, _round_up(E, 128))

    n_lane = _round_up(num_nodes, 128)
    d_sub = _round_up(dim, _sublane_multiple(z.dtype))

    def _fused_bytes(t):
        resident = 2 * 2 * d_sub * n_lane * itemsize          # zsT, zT (x2 buffers)
        idx = 2 * 2 * 8 * t * 4                                # src/dst (1, t) blocks
        out = 2 * 8 * t * 4                                    # (1, t) f32 output
        inter = (2 * _round_up(num_nodes, 8) * t * 4           # one-hots
                 + 3 * _round_up(dim, 8) * t * 4)              # gathers + product
        return resident + idx + out + inter

    def _stream_bytes(t):
        inputs = 2 * 2 * d_sub * t * itemsize                  # two (D, t) streams
        out = 2 * 8 * t * 4
        inter = 3 * _round_up(dim, 8) * t * 4
        return inputs + out + inter

    use_fused = (force_path != "stream") and (
        force_path == "fused"
        or (num_nodes <= 4096 and _fused_bytes(128) <= vmem_budget))

    block_bytes = _fused_bytes if use_fused else _stream_bytes
    while tile > 128 and block_bytes(tile) > vmem_budget:
        tile = max(128, _round_up(tile // 2, 128))
    # Cap padding waste (review: E = tile+1 must not nearly double the work).
    while tile > 128 and (_round_up(E, tile) - E) > max(E // 10, 127):
        tile = max(128, _round_up(tile // 2, 128))

    e_pad = _round_up(E, tile)
    grid = (e_pad // tile,)
    pad = e_pad - E

    # Pad only the index vectors (padded edges compute node0*node0; sliced off).
    src = edge_index[0].astype(jnp.int32)
    dst = edge_index[1].astype(jnp.int32)
    if pad:
        src = jnp.pad(src, (0, pad))
        dst = jnp.pad(dst, (0, pad))
    src = src.reshape(1, e_pad)
    dst = dst.reshape(1, e_pad)

    # Feature-major node tables; fold the per-node weight ONCE at node scale.
    z_t = z.T                                  # (D, N)
    zs_t = z_t * weight[None, :]               # (D, N)

    out_shape = jax.ShapeDtypeStruct((1, e_pad), jnp.float32)
    out_spec = pl.BlockSpec((1, tile), lambda i: (0, i))

    if use_fused:
        kernel = functools.partial(_fused_gather_kernel, sigmoid=sigmoid)
        in_specs = [
            pl.BlockSpec((1, tile), lambda i: (0, i)),           # src indices
            pl.BlockSpec((1, tile), lambda i: (0, i)),           # dst indices
            pl.BlockSpec((dim, num_nodes), lambda i: (0, 0)),    # z_scaled.T resident
            pl.BlockSpec((dim, num_nodes), lambda i: (0, 0)),    # z.T        resident
        ]
        args = (src, dst, zs_t, z_t)
        cost = pl.CostEstimate(
            flops=4 * e_pad * num_nodes * dim + 2 * e_pad * dim,
            transcendentals=e_pad if sigmoid else 0,
            bytes_accessed=2 * num_nodes * dim * itemsize + 12 * e_pad,
        )
    else:
        # Large-N fallback: data-dependent row gather stays in XLA (feature-major
        # column gather from the once-transposed tables), kernel just streams.
        z_src = jnp.take(zs_t, src[0], axis=1)                   # (D, E_pad)
        z_dst = jnp.take(z_t, dst[0], axis=1)                    # (D, E_pad)
        kernel = functools.partial(_streaming_kernel, sigmoid=sigmoid)
        in_specs = [
            pl.BlockSpec((dim, tile), lambda i: (0, i)),
            pl.BlockSpec((dim, tile), lambda i: (0, i)),
        ]
        args = (z_src, z_dst)
        cost = pl.CostEstimate(
            flops=2 * e_pad * dim,
            transcendentals=e_pad if sigmoid else 0,
            bytes_accessed=2 * e_pad * dim * itemsize + 4 * e_pad,
        )

    # v7x: request true cross-TensorCore sharding of the edge grid; fall back to
    # plain "parallel" if CORE_PARALLEL is rejected for this chip/shape.
    if gen == "v7":
        semantics_candidates = ((pltpu.CORE_PARALLEL,), ("parallel",))
    else:
        semantics_candidates = (("parallel",),)

    out = None
    last_err = None
    for sem in semantics_candidates:
        try:
            out = pl.pallas_call(
                kernel,
                out_shape=out_shape,
                grid_spec=pl.GridSpec(grid=grid, in_specs=in_specs,
                                      out_specs=out_spec),
                compiler_params=pltpu.CompilerParams(
                    dimension_semantics=sem,
                    vmem_limit_bytes=vmem_limit,
                ),
                cost_estimate=cost,
            )(*args)
            break
        except Exception as err:  # e.g. CORE_PARALLEL unsupported -> retry
            last_err = err
            out = None
    if out is None:
        raise last_err

    return out[0, :E].astype(z.dtype)


def tf_decoder_reference(z, weight, edge_index, sigmoid=True):
    """Pure-JAX reference matching the PyTorch forward exactly."""
    z_new = z * weight[:, None]
    value = jnp.sum(z_new[edge_index[0]] * z[edge_index[1]], axis=1)
    return jax.nn.sigmoid(value) if sigmoid else value


if __name__ == "__main__":
    key = jax.random.PRNGKey(0)
    k_z, k_w, k_src, k_dst = jax.random.split(key, 4)

    num_nodes = 16   # self.num_nodes
    dim = 32         # embedding dim of z
    num_edges = 64

    # Deterministic "parameter" init: weight ~ Normal(0, 1/sqrt(in_dim)), in_dim = 1.
    in_dim = 1
    weight = jax.random.normal(k_w, (num_nodes,), dtype=jnp.float32) / jnp.sqrt(
        jnp.float32(in_dim))
    z = jax.random.normal(k_z, (num_nodes, dim), dtype=jnp.float32)
    edge_index = jnp.stack([
        jax.random.randint(k_src, (num_edges,), 0, num_nodes, dtype=jnp.int32),
        jax.random.randint(k_dst, (num_edges,), 0, num_nodes, dtype=jnp.int32),
    ])  # [2, E]

    ref = tf_decoder_reference(z, weight, edge_index, sigmoid=True)

    # Primary path: fused in-kernel gather (auto-selected, node table fits VMEM).
    out = jax.block_until_ready(tf_decoder_forward(z, weight, edge_index, sigmoid=True))
    assert out.shape == (num_edges,)
    assert jnp.allclose(out, ref, atol=1e-5, rtol=1e-5), "fused path mismatch vs reference"

    # Large-graph streaming fallback, forced at small shapes to exercise it.
    out_s = jax.block_until_ready(
        tf_decoder_forward(z, weight, edge_index, sigmoid=True, force_path="stream"))
    assert jnp.allclose(out_s, ref, atol=1e-5, rtol=1e-5), "streaming path mismatch vs reference"

    print("KERNEL_OK")
</pallas_src>

<mosaic_0001>
module attributes {stable_mosaic.version = 11 : i64} {
  func.func @_fused_gather_kernel(%arg0: i32, %arg1: memref<1x128xi32, #tpu.memory_space<vmem>>, %arg2: memref<1x128xi32, #tpu.memory_space<vmem>>, %arg3: memref<32x16xf32, #tpu.memory_space<vmem>>, %arg4: memref<32x16xf32, #tpu.memory_space<vmem>>, %arg5: memref<1x128xf32, #tpu.memory_space<vmem>>) attributes {dimension_semantics = [#tpu.dimension_semantics<parallel>], iteration_bounds = array<i64: 1>, scalar_prefetch = 0 : i64, scratch_operands = 0 : i64, tpu.core_type = #tpu.core_type<tc>, window_params = [{transform_indices = @transform_0, window_bounds = array<i64: 1, 128>}, {transform_indices = @transform_1, window_bounds = array<i64: 1, 128>}, {pipeline_mode = #tpu.pipeline_mode<synchronous>, transform_indices = @transform_2, window_bounds = array<i64: 32, 16>}, {pipeline_mode = #tpu.pipeline_mode<synchronous>, transform_indices = @transform_3, window_bounds = array<i64: 32, 16>}, {transform_indices = @transform_4, window_bounds = array<i64: 1, 128>}]} {
    %0 = tpu.iota {dimensions = array<i32: 0>} : vector<16x128xi32>
    %c0 = arith.constant 0 : index
    %c0_0 = arith.constant 0 : index
    %1 = vector.load %arg1[%c0, %c0_0] : memref<1x128xi32, #tpu.memory_space<vmem>>, vector<1x128xi32>
    %2 = vector.broadcast %1 : vector<1x128xi32> to vector<16x128xi32>
    %3 = arith.cmpi eq, %0, %2 : vector<16x128xi32>
    %4 = arith.extui %3 : vector<16x128xi1> to vector<16x128xi32>
    %5 = arith.sitofp %4 : vector<16x128xi32> to vector<16x128xf32>
    %c0_1 = arith.constant 0 : index
    %c0_2 = arith.constant 0 : index
    %6 = vector.load %arg2[%c0_1, %c0_2] : memref<1x128xi32, #tpu.memory_space<vmem>>, vector<1x128xi32>
    %7 = vector.broadcast %6 : vector<1x128xi32> to vector<16x128xi32>
    %8 = arith.cmpi eq, %0, %7 : vector<16x128xi32>
    %9 = arith.extui %8 : vector<16x128xi1> to vector<16x128xi32>
    %10 = arith.sitofp %9 : vector<16x128xi32> to vector<16x128xf32>
    %c0_3 = arith.constant 0 : index
    %c0_4 = arith.constant 0 : index
    %11 = vector.load %arg3[%c0_3, %c0_4] : memref<32x16xf32, #tpu.memory_space<vmem>>, vector<32x16xf32>
    %cst = arith.constant dense<0.000000e+00> : vector<32x128xf32>
    %12 = tpu.matmul %11, %5, %cst {dimension_numbers = #tpu.dot_dimension_numbers<[1], [0], [0], [1], [0, 0, 1, 1], [], []>} : vector<32x16xf32>, vector<16x128xf32>, vector<32x128xf32> -> vector<32x128xf32>
    %c0_5 = arith.constant 0 : index
    %c0_6 = arith.constant 0 : index
    %13 = vector.load %arg4[%c0_5, %c0_6] : memref<32x16xf32, #tpu.memory_space<vmem>>, vector<32x16xf32>
    %cst_7 = arith.constant dense<0.000000e+00> : vector<32x128xf32>
    %14 = tpu.matmul %13, %10, %cst_7 {dimension_numbers = #tpu.dot_dimension_numbers<[1], [0], [0], [1], [0, 0, 1, 1], [], []>} : vector<32x16xf32>, vector<16x128xf32>, vector<32x128xf32> -> vector<32x128xf32>
    %15 = arith.mulf %12, %14 : vector<32x128xf32>
    %cst_8 = arith.constant dense<0.000000e+00> : vector<128xf32>
    %16 = vector.multi_reduction <add>, %15, %cst_8 [0] : vector<32x128xf32> to vector<128xf32>
    %17 = vector.shape_cast %16 : vector<128xf32> to vector<1x128xf32>
    %18 = arith.negf %17 : vector<1x128xf32>
    %19 = math.exp %18 : vector<1x128xf32>
    %cst_9 = arith.constant 1.000000e+00 : f32
    %20 = vector.broadcast %cst_9 : f32 to vector<1x128xf32>
    %21 = arith.addf %20, %19 : vector<1x128xf32>
    %22 = arith.divf %20, %21 : vector<1x128xf32>
    %c0_10 = arith.constant 0 : index
    %c0_11 = arith.constant 0 : index
    %23 = vector.load %arg5[%c0_10, %c0_11] : memref<1x128xf32, #tpu.memory_space<vmem>>, vector<1x128xf32>
    tpu.vector_store %arg5[%c0_10, %c0_11], %22 {strides = array<i32>} : memref<1x128xf32, #tpu.memory_space<vmem>>, vector<1x128xf32>,
    return
  }
  func.func @transform_0(%arg0: i32) -> (i32, i32) {
    %c0_i32 = arith.constant 0 : i32
    %c0_i32_0 = arith.constant 0 : i32
    return %c0_i32, %arg0 : i32, i32
  }
  func.func @transform_1(%arg0: i32) -> (i32, i32) {
    %c0_i32 = arith.constant 0 : i32
    %c0_i32_0 = arith.constant 0 : i32
    return %c0_i32, %arg0 : i32, i32
  }
  func.func @transform_2(%arg0: i32) -> (i32, i32) {
    %c0_i32 = arith.constant 0 : i32
    %c0_i32_0 = arith.constant 0 : i32
    %c0_i32_1 = arith.constant 0 : i32
    return %c0_i32, %c0_i32_0 : i32, i32
  }
  func.func @transform_3(%arg0: i32) -> (i32, i32) {
    %c0_i32 = arith.constant 0 : i32
    %c0_i32_0 = arith.constant 0 : i32
    %c0_i32_1 = arith.constant 0 : i32
    return %c0_i32, %c0_i32_0 : i32, i32
  }
  func.func @transform_4(%arg0: i32) -> (i32, i32) {
    %c0_i32 = arith.constant 0 : i32
    %c0_i32_0 = arith.constant 0 : i32
    return %c0_i32, %arg0 : i32, i32
  }
}

</mosaic_0001>

<bundles_post_ra>
// kernel: tpu_custom_call.1
= control target key start
LH: loop header
LB: loop body
LE: loop exit
PB: predicated region body
PF: predicated region fallthrough
CT: control target
= control target key end

     0   :  { %v18_v0 = vlaneseq  ;;  %vm47_vm0 = vcmask 130048   ;;  %s427_s0 = inlined_call_operand.vmem [shape: s32[1,128], index: 0, kind: input, shape index: {}]   ;;  %s428_s1 = inlined_call_operand.vmem [shape: s32[1,128], index: 1, kind: input, shape index: {}]   ;;  %s429_s2 = inlined_call_operand.vmem [shape: f32[32,16], index: 2, kind: input, shape index: {}]   ;;  %s430_s3 = inlined_call_operand.vmem [shape: f32[32,16], index: 3, kind: input, shape index: {}]   ;;  %s431_s4 = inlined_call_operand.hbm [shape: f32[1,128], index: 4, kind: output, shape index: {}]  }
   0x1   :  { %v43_v1 = vld [vmem:[%s429_s2] sm:$0xff] }
   0x2   :  { %v145_v2 = vld [vmem:[%s430_s3] sm:$0xff]  ;;  %v19_v3 = vshrl.u32 %v18_v0, 7  ;;  %315 = vmatprep.mubr.msk.f32.mxu0 %vm47_vm0, %v43_v1 }
   0x3   :  { %325 = vmatprep.mubr.msk.f32.mxu1 %vm47_vm0, %v145_v2  ;;  %v280_v4 = vld [vmem:[%s427_s0] ss:$0 sm:$0xff] }
   0x4   :  { %v283_v5 = vld [vmem:[%s428_s1] ss:$0 sm:$0xff] }
   0x5   :  { %9 = vsyncpa [#allocation3], 0  ;;  %v20_v6 = vadd.s32 8, %v19_v3  ;;  %vm26_vm1 = vcmp.eq.s32.totalorder %v19_v3, %v280_v4  ;;  %vm37_vm3 = vcmp.eq.s32.totalorder %v19_v3, %v283_v5  ;;  %v359_v7 = vmov 1.0   ;;  %v44_v8 = vld [vmem:[%s429_s2 + $0x8] sm:$0xff]  ;;  %v45_v10 = vld [vmem:[%s429_s2 + $0x10] sm:$0xff] }
   0x6   :  { %v146_v9 = vld [vmem:[%s430_s3 + $0x8] sm:$0xff]  ;;  %v147_v11 = vld [vmem:[%s430_s3 + $0x10] sm:$0xff]  ;;  %v46_v12 = vld [vmem:[%s429_s2 + $0x18] sm:$0xff]  ;;  %s360_s2 = smov [#allocation2]  }
   0x7   :  { %vm27_vm2 = vcmp.eq.s32.totalorder %v20_v6, %v280_v4  ;;  %vm38_vm4 = vcmp.eq.s32.totalorder %v20_v6, %v283_v5  ;;  %v148_v13 = vld [vmem:[%s430_s3 + $0x18] sm:$0xff]  ;;  %s272_s3 = sshll.u32 %s360_s2, 4  ;;  %s273_s3 = int_to_ptr.vmem [resolvable:$true] %s272_s3 }
   0x8   :  { %311 = vmatprep.subr.msk.mxu0 %vm27_vm2, %v359_v7  ;;  %321 = vmatprep.subr.msk.mxu1 %vm38_vm4, %v359_v7  ;;  %s337_s7 = scalar_lea.vmem %s273_s3, 16  ;;  %s341_s8 = scalar_lea.vmem %s273_s3, 32 }
   0x9   :  { %312 = vmatpush3.msk.msra.mxu0 %vm27_vm2, %v359_v7  ;;  %322 = vmatpush3.msk.msra.mxu1 %vm38_vm4, %v359_v7  ;;  %p338_p0 = scmp.ne.s32.totalorder %s273_s3, %s337_s7  ;;  %p342_p1 = scmp.lt.s32.totalorder %s273_s3, %s273_s3 }
   0xa   :  { %313 = vmatprep.subr.msk.mxu0 %vm26_vm1, %v359_v7  ;;  %323 = vmatprep.subr.msk.mxu1 %vm37_vm3, %v359_v7  ;;  %p343_p2 = scmp.lt.s32.totalorder %s341_s8, %s337_s7 }
   0xb   :  { %314 = vmatpush3.msk.msra.mxu0 %vm26_vm1, %v359_v7  ;;  %324 = vmatpush3.msk.msra.mxu1 %vm37_vm3, %v359_v7 }
   0xc   :  { %316 = vmatmul.mubr.msk.f32.vlgmr.msra.gmra.mxu0 %vm47_vm0, %v44_v8  ;;  %326 = vmatmul.mubr.msk.f32.vlgmr.msra.gmra.mxu1 %vm47_vm0, %v146_v9  ;;  %p344_p3 = por %p343_p2, %p342_p1 }
   0xd   :  { %318 = vmatprep.mubr.msk.f32.mxu0 %vm47_vm0, %v45_v10  ;;  %328 = vmatprep.mubr.msk.f32.mxu1 %vm47_vm0, %v147_v11 }
   0xe   :  { %p345_p4 = pnand %p344_p3, %p338_p0 }
  0x10   :  { %319 = vmatmul.mubr.msk.f32.gmra.mxu0 %vm47_vm0, %v46_v12  ;;  %329 = vmatmul.mubr.msk.f32.gmra.mxu1 %vm47_vm0, %v148_v13 }
  0xcc   :  { %v317_v14 = vpop.f32.mrf.mxu0  ;;  %v327_v15 = vpop.f32.mrf.mxu1 }
  0xcd   :  { %v247_v21 = vmul.f32 %v327_v15, %v317_v14 }
  0xce   :  { %v126_v16 = vpop.f32.mrf.mxu0  ;;  %v227_v17 = vpop.f32.mrf.mxu1 }
  0xcf   :  { %v246_v18 = vmul.f32 %v227_v17, %v126_v16 }
  0xd0   :  { %v320_v19 = vpop.f32.mrf.mxu0  ;;  %v330_v20 = vpop.f32.mrf.mxu1 }
  0xd1   :  { %v250_v24 = vadd.f32 %v247_v21, %v246_v18  ;;  %v249_v26 = vmul.f32 %v330_v20, %v320_v19 }
  0xd2   :  { %v136_v22 = vpop.f32.mrf.mxu0  ;;  %v237_v23 = vpop.f32.mrf.mxu1 }
  0xd3   :  { %v248_v25 = vmul.f32 %v237_v23, %v136_v22 }
  0xd5   :  { %v251_v27 = vadd.f32 %v250_v24, %v248_v25 }
  0xd7   :  { %v252_v28 = vadd.f32 %v251_v27, %v249_v26 }
  0xd9   :  { %v253_v29 = vrot.slane %v252_v28, 4 }
  0xdb   :  { %v254_v30 = vadd.f32 %v253_v29, %v252_v28 }
  0xdd   :  { %v255_v31 = vrot.slane %v254_v30, 2 }
  0xdf   :  { %v256_v32 = vadd.f32 %v255_v31, %v254_v30 }
  0xe1   :  { %v257_v33 = vrot.slane %v256_v32, 1 }
  0xe3   :  { %v258_v34 = vadd.f32 %v257_v33, %v256_v32 }
  0xe5   :  { %v298_v35 = vmul.f32 -1.442695, %v258_v34 }
  0xe7   :  { %333 = vpow2.f32 %v298_v35 }
  0xf4   :  { %v334_v36 = vpop.eup %333 }
  0xf5   :  { %v262_v37 = vadd.f32 1.0, %v334_v36 }
  0xf7   :  { %335 = vrcp.f32 %v262_v37 }
 0x104   :  { %v336_v38 = vpop.eup %335 }
 0x105   :  { %265 = vst [vmem:[#allocation2] sm:$0x1] %v336_v38 }
 0x106   :  { %348 = shalt.err (!%p345_p4)
}
 0x107   :  { %275 = dma.vmem_to_hbm [thread:$0]  %s273_s3, 16, %s431_s4, [#allocation3]  }
 0x108   :  { %357 = dma.done.wait [#allocation3], 16  }
 0x109   :  { %358 = vsyncadd [#allocation3], 4294967280 }
 0x10a   :  { %279 = vsyncpa [#allocation3], 1 }

</bundles_post_ra>
